<compile_context>
chip_gen: v6e
topology: v6e:2x2x1
jax: 0.10.0
libtpu: 0.0.40
codegen_flags: <defaults>
</compile_context>

<pallas_src>
import functools

import jax
import jax.numpy as jnp
from jax.experimental import pallas as pl
from jax.experimental.pallas import tpu as pltpu

_LANE = 128
_SUBLANE = 8


def _round_up(x, m):
    return (x + m - 1) // m * m


def _vmem_budget_bytes():
    """Generation-aware usable-VMEM budget (~48 MiB on v7x, ~96 MiB v5e/v6e)."""
    try:
        cap = pltpu.get_tpu_info().vmem_capacity_bytes
    except Exception:
        cap = 64 * 1024 * 1024  # conservative: v7x physical per-TC
    return int(cap * 3 // 4)


# --------------------------------------------------------------------------- #
# Kernel
# --------------------------------------------------------------------------- #
def _fcnet_fused_kernel(*refs, n_layers, compute_dtype):
    """refs = (x_ref, w0, b0, w1, b1, ..., o_ref); one batch tile per call.

    x_ref: (TM, D0) f32 (cast to bf16 in vregs), w_i: (K_i, N_i) bf16,
    b_i: (1, N_i) f32, o_ref: (TM, N_last) f32.  Output dims padded to lane
    multiples; layer-0 K matches raw (unpadded) x features.
    """
    x_ref = refs[0]
    o_ref = refs[-1]
    wb = refs[1:-1]
    h = x_ref[...].astype(compute_dtype)  # f32 -> bf16 cast, free under DMA slack
    for i in range(n_layers):
        w = wb[2 * i][...]
        b = wb[2 * i + 1][...]
        # MXU matmul in bf16 with f32 accumulation; epilogue stays in f32.
        y = jnp.dot(h, w, preferred_element_type=jnp.float32) + b
        if i < n_layers - 1:
            h = jnp.maximum(y, 0.0).astype(compute_dtype)  # back to bf16 for MXU
        else:
            o_ref[...] = y.astype(o_ref.dtype)


# --------------------------------------------------------------------------- #
# One-time parameter preparation (NOT in the per-call path)
# --------------------------------------------------------------------------- #
def prepare_fcnet_params(params, compute_dtype=jnp.bfloat16):
    """Zero-pad weights/biases to lane multiples once.

    Layer-0's input (K) dim is left unpadded so x never needs a padded copy;
    all output (N) dims are padded to 128 lanes.  Padded rows/cols are zero so
    they stay inert through matmul + bias + ReLU.

    Returns (flat_padded_params, out_dim).
    """
    flat = []
    for i, (w, b) in enumerate(params):
        d_in, d_out = w.shape
        k = d_in if i == 0 else _round_up(d_in, _LANE)
        n = _round_up(d_out, _LANE)
        w_p = jnp.zeros((k, n), compute_dtype)
        w_p = w_p.at[:d_in, :d_out].set(w.astype(compute_dtype))
        b_p = jnp.zeros((1, n), jnp.float32)
        b_p = b_p.at[:, :d_out].set(b.astype(jnp.float32))
        flat += [w_p, b_p]
    return tuple(flat), params[-1][0].shape[1]


def _choose_tile(B, d0, n_out_p, x_itemsize, weight_bytes, budget):
    tm = min(512, _round_up(B, _SUBLANE))
    # Ensure >=2 grid steps when B allows it, so the "parallel" batch axis
    # actually shards across both TensorCores on v7x.
    if B > _SUBLANE and pl.cdiv(B, tm) < 2:
        tm = _round_up(pl.cdiv(B, 2), _SUBLANE)

    def footprint(t):
        # 2x: default double-buffering for the streamed x/out tiles and (to be
        # conservative) for the constant-index weight/bias blocks.
        return 2 * (t * d0 * x_itemsize + t * n_out_p * 4) + 2 * weight_bytes

    while footprint(tm) > budget and tm > _SUBLANE:
        tm = max(_SUBLANE, _round_up(tm // 2, _SUBLANE))
    if footprint(tm) > budget:
        # TODO(synk): fall back to a K/N-tiled multi-pass path (f32 accumulator
        # scratch) for FC stacks whose weights do not fit VMEM.
        raise ValueError(
            "FCNet weights too large for the fully-fused VMEM-resident kernel")
    return tm


# --------------------------------------------------------------------------- #
# Forward
# --------------------------------------------------------------------------- #
def fcnet_forward(x, padded_params, out_dim, *, compute_dtype=jnp.bfloat16):
    """FCNet.forward: flatten(x, 1) -> fused FC stack (ReLU on all but last).

    `padded_params` must come from prepare_fcnet_params (pad once, reuse).
    `out_dim` is the unpadded width of the final layer (static).
    """
    B = x.shape[0]
    xf = x.reshape(B, -1)  # free reshape for contiguous NCHW
    d0 = xf.shape[1]
    n_layers = len(padded_params) // 2
    assert padded_params[0].shape[0] == d0, (
        "padded params were prepared for a different input feature dim")
    n_out_p = padded_params[-1].shape[-1]

    weight_bytes = sum(int(p.size) * p.dtype.itemsize for p in padded_params)
    budget = _vmem_budget_bytes()
    tm = _choose_tile(B, d0, n_out_p, xf.dtype.itemsize, weight_bytes, budget)
    grid = (pl.cdiv(B, tm),)

    in_specs = [pl.BlockSpec((tm, d0), lambda i: (i, 0))]
    for p in padded_params:
        r, c = p.shape
        # Constant index_map -> weight/bias blocks fetched once, reused for
        # every batch tile.
        in_specs.append(pl.BlockSpec((r, c), lambda i: (0, 0)))

    flops = 2 * B * sum(
        padded_params[2 * i].shape[0] * padded_params[2 * i].shape[1]
        for i in range(n_layers))
    bytes_accessed = (int(xf.size) * xf.dtype.itemsize
                      + weight_bytes
                      + B * n_out_p * 4)

    kernel = functools.partial(
        _fcnet_fused_kernel, n_layers=n_layers, compute_dtype=compute_dtype)
    out = pl.pallas_call(
        kernel,
        out_shape=jax.ShapeDtypeStruct((B, n_out_p), jnp.float32),
        grid=grid,
        in_specs=in_specs,
        out_specs=pl.BlockSpec((tm, n_out_p), lambda i: (i, 0)),
        compiler_params=pltpu.CompilerParams(
            dimension_semantics=("parallel",),
            vmem_limit_bytes=budget,
        ),
        cost_estimate=pl.CostEstimate(
            flops=flops, transcendentals=0, bytes_accessed=bytes_accessed),
    )(xf, *padded_params)
    return out[:, :out_dim]


# --------------------------------------------------------------------------- #
# Init / reference
# --------------------------------------------------------------------------- #
def init_fcnet_params(dim_list, key):
    """Deterministic init mirroring nn.Linear default (uniform +-1/sqrt(fan_in)).

    Weights are stored transposed relative to PyTorch: (D_in, D_out).
    """
    params = []
    for i in range(len(dim_list) - 1):
        d_in, d_out = dim_list[i], dim_list[i + 1]
        key, kw, kb = jax.random.split(key, 3)
        bound = 1.0 / jnp.sqrt(jnp.float32(d_in))
        w = jax.random.uniform(kw, (d_in, d_out), jnp.float32, -bound, bound)
        b = jax.random.uniform(kb, (d_out,), jnp.float32, -bound, bound)
        params.append((w, b))
    return params


def fcnet_ref(x, params, compute_dtype=jnp.float32):
    """Pure-JAX reference.  compute_dtype=bf16 mirrors the kernel's numerics."""
    B = x.shape[0]
    h = x.reshape(B, -1).astype(compute_dtype)
    n_layers = len(params)
    for idx, (w, b) in enumerate(params):
        y = jnp.dot(h, w.astype(compute_dtype),
                    preferred_element_type=jnp.float32) + b.astype(jnp.float32)
        if idx < n_layers - 1:
            h = jnp.maximum(y, 0.0).astype(compute_dtype)
        else:
            h = y
    return h


if __name__ == "__main__":
    key = jax.random.PRNGKey(0)
    key, kx = jax.random.split(key)

    # NCHW image input, flattened to a feature vector of size 4*16*16 = 1024.
    B, C, H, W = 2, 4, 16, 16
    x = jax.random.normal(kx, (B, C, H, W), jnp.float32)

    dim_list = [C * H * W, 32, 32, 10]
    params = init_fcnet_params(dim_list, key)

    # Pad parameters ONCE (outside the per-call path), then jit the forward.
    padded_params, out_dim = prepare_fcnet_params(params)
    padded_params = jax.block_until_ready(padded_params)

    fwd = jax.jit(fcnet_forward, static_argnums=(2,))
    out = fwd(x, padded_params, out_dim)
    out = jax.block_until_ready(out)
    assert out.shape == (B, dim_list[-1]), out.shape

    # Tight check against a reference with identical numerics
    # (bf16 matmul inputs, f32 accumulation, f32 bias/ReLU).
    ref_bf16 = fcnet_ref(x, params, compute_dtype=jnp.bfloat16)
    assert jnp.allclose(out, ref_bf16, atol=1e-3, rtol=1e-3), (
        float(jnp.max(jnp.abs(out - ref_bf16))))

    # Sanity check against full-f32 semantics of the original PyTorch module.
    ref_f32 = fcnet_ref(x, params, compute_dtype=jnp.float32)
    assert jnp.allclose(out, ref_f32, atol=2e-2, rtol=2e-2), (
        float(jnp.max(jnp.abs(out - ref_f32))))

    print("KERNEL_OK")
</pallas_src>

<mosaic_0001>
module attributes {stable_mosaic.version = 11 : i64} {
  func.func @_fcnet_fused_kernel(%arg0: i32, %arg1: memref<8x1024xf32, #tpu.memory_space<vmem>>, %arg2: memref<1024x128xbf16, #tpu.memory_space<vmem>>, %arg3: memref<1x128xf32, #tpu.memory_space<vmem>>, %arg4: memref<128x128xbf16, #tpu.memory_space<vmem>>, %arg5: memref<1x128xf32, #tpu.memory_space<vmem>>, %arg6: memref<128x128xbf16, #tpu.memory_space<vmem>>, %arg7: memref<1x128xf32, #tpu.memory_space<vmem>>, %arg8: memref<8x128xf32, #tpu.memory_space<vmem>>) attributes {dimension_semantics = [#tpu.dimension_semantics<parallel>], iteration_bounds = array<i64: 1>, scalar_prefetch = 0 : i64, scratch_operands = 0 : i64, tpu.core_type = #tpu.core_type<tc>, window_params = [{transform_indices = @transform_0, window_bounds = array<i64: 8, 1024>}, {pipeline_mode = #tpu.pipeline_mode<synchronous>, transform_indices = @transform_1, window_bounds = array<i64: 1024, 128>}, {pipeline_mode = #tpu.pipeline_mode<synchronous>, transform_indices = @transform_2, window_bounds = array<i64: 1, 128>}, {pipeline_mode = #tpu.pipeline_mode<synchronous>, transform_indices = @transform_3, window_bounds = array<i64: 128, 128>}, {pipeline_mode = #tpu.pipeline_mode<synchronous>, transform_indices = @transform_4, window_bounds = array<i64: 1, 128>}, {pipeline_mode = #tpu.pipeline_mode<synchronous>, transform_indices = @transform_5, window_bounds = array<i64: 128, 128>}, {pipeline_mode = #tpu.pipeline_mode<synchronous>, transform_indices = @transform_6, window_bounds = array<i64: 1, 128>}, {transform_indices = @transform_7, window_bounds = array<i64: 8, 128>}]} {
    %c0 = arith.constant 0 : index
    %c0_0 = arith.constant 0 : index
    %0 = vector.load %arg1[%c0, %c0_0] : memref<8x1024xf32, #tpu.memory_space<vmem>>, vector<8x1024xf32>
    %1 = arith.truncf %0 : vector<8x1024xf32> to vector<8x1024xbf16>
    %c0_1 = arith.constant 0 : index
    %c0_2 = arith.constant 0 : index
    %2 = vector.load %arg2[%c0_1, %c0_2] : memref<1024x128xbf16, #tpu.memory_space<vmem>>, vector<1024x128xbf16>
    %c0_3 = arith.constant 0 : index
    %c0_4 = arith.constant 0 : index
    %3 = vector.load %arg3[%c0_3, %c0_4] : memref<1x128xf32, #tpu.memory_space<vmem>>, vector<1x128xf32>
    %cst = arith.constant dense<0.000000e+00> : vector<8x128xf32>
    %4 = tpu.matmul %1, %2, %cst {dimension_numbers = #tpu.dot_dimension_numbers<[1], [0], [0], [1], [0, 0, 1, 1], [], []>} : vector<8x1024xbf16>, vector<1024x128xbf16>, vector<8x128xf32> -> vector<8x128xf32>
    %5 = vector.broadcast %3 : vector<1x128xf32> to vector<8x128xf32>
    %6 = arith.addf %4, %5 : vector<8x128xf32>
    %cst_5 = arith.constant 0.000000e+00 : f32
    %7 = vector.broadcast %cst_5 : f32 to vector<8x128xf32>
    %8 = arith.maximumf %6, %7 : vector<8x128xf32>
    %9 = arith.truncf %8 : vector<8x128xf32> to vector<8x128xbf16>
    %c0_6 = arith.constant 0 : index
    %c0_7 = arith.constant 0 : index
    %10 = vector.load %arg4[%c0_6, %c0_7] : memref<128x128xbf16, #tpu.memory_space<vmem>>, vector<128x128xbf16>
    %c0_8 = arith.constant 0 : index
    %c0_9 = arith.constant 0 : index
    %11 = vector.load %arg5[%c0_8, %c0_9] : memref<1x128xf32, #tpu.memory_space<vmem>>, vector<1x128xf32>
    %cst_10 = arith.constant dense<0.000000e+00> : vector<8x128xf32>
    %12 = tpu.matmul %9, %10, %cst_10 {dimension_numbers = #tpu.dot_dimension_numbers<[1], [0], [0], [1], [0, 0, 1, 1], [], []>} : vector<8x128xbf16>, vector<128x128xbf16>, vector<8x128xf32> -> vector<8x128xf32>
    %13 = vector.broadcast %11 : vector<1x128xf32> to vector<8x128xf32>
    %14 = arith.addf %12, %13 : vector<8x128xf32>
    %cst_11 = arith.constant 0.000000e+00 : f32
    %15 = vector.broadcast %cst_11 : f32 to vector<8x128xf32>
    %16 = arith.maximumf %14, %15 : vector<8x128xf32>
    %17 = arith.truncf %16 : vector<8x128xf32> to vector<8x128xbf16>
    %c0_12 = arith.constant 0 : index
    %c0_13 = arith.constant 0 : index
    %18 = vector.load %arg6[%c0_12, %c0_13] : memref<128x128xbf16, #tpu.memory_space<vmem>>, vector<128x128xbf16>
    %c0_14 = arith.constant 0 : index
    %c0_15 = arith.constant 0 : index
    %19 = vector.load %arg7[%c0_14, %c0_15] : memref<1x128xf32, #tpu.memory_space<vmem>>, vector<1x128xf32>
    %cst_16 = arith.constant dense<0.000000e+00> : vector<8x128xf32>
    %20 = tpu.matmul %17, %18, %cst_16 {dimension_numbers = #tpu.dot_dimension_numbers<[1], [0], [0], [1], [0, 0, 1, 1], [], []>} : vector<8x128xbf16>, vector<128x128xbf16>, vector<8x128xf32> -> vector<8x128xf32>
    %21 = vector.broadcast %19 : vector<1x128xf32> to vector<8x128xf32>
    %22 = arith.addf %20, %21 : vector<8x128xf32>
    %c0_17 = arith.constant 0 : index
    %c0_18 = arith.constant 0 : index
    %23 = vector.load %arg8[%c0_17, %c0_18] : memref<8x128xf32, #tpu.memory_space<vmem>>, vector<8x128xf32>
    tpu.vector_store %arg8[%c0_17, %c0_18], %22 {strides = array<i32>} : memref<8x128xf32, #tpu.memory_space<vmem>>, vector<8x128xf32>,
    return
  }
  func.func @transform_0(%arg0: i32) -> (i32, i32) {
    %c0_i32 = arith.constant 0 : i32
    %c0_i32_0 = arith.constant 0 : i32
    return %arg0, %c0_i32 : i32, i32
  }
  func.func @transform_1(%arg0: i32) -> (i32, i32) {
    %c0_i32 = arith.constant 0 : i32
    %c0_i32_0 = arith.constant 0 : i32
    %c0_i32_1 = arith.constant 0 : i32
    return %c0_i32, %c0_i32_0 : i32, i32
  }
  func.func @transform_2(%arg0: i32) -> (i32, i32) {
    %c0_i32 = arith.constant 0 : i32
    %c0_i32_0 = arith.constant 0 : i32
    %c0_i32_1 = arith.constant 0 : i32
    return %c0_i32, %c0_i32_0 : i32, i32
  }
  func.func @transform_3(%arg0: i32) -> (i32, i32) {
    %c0_i32 = arith.constant 0 : i32
    %c0_i32_0 = arith.constant 0 : i32
    %c0_i32_1 = arith.constant 0 : i32
    return %c0_i32, %c0_i32_0 : i32, i32
  }
  func.func @transform_4(%arg0: i32) -> (i32, i32) {
    %c0_i32 = arith.constant 0 : i32
    %c0_i32_0 = arith.constant 0 : i32
    %c0_i32_1 = arith.constant 0 : i32
    return %c0_i32, %c0_i32_0 : i32, i32
  }
  func.func @transform_5(%arg0: i32) -> (i32, i32) {
    %c0_i32 = arith.constant 0 : i32
    %c0_i32_0 = arith.constant 0 : i32
    %c0_i32_1 = arith.constant 0 : i32
    return %c0_i32, %c0_i32_0 : i32, i32
  }
  func.func @transform_6(%arg0: i32) -> (i32, i32) {
    %c0_i32 = arith.constant 0 : i32
    %c0_i32_0 = arith.constant 0 : i32
    %c0_i32_1 = arith.constant 0 : i32
    return %c0_i32, %c0_i32_0 : i32, i32
  }
  func.func @transform_7(%arg0: i32) -> (i32, i32) {
    %c0_i32 = arith.constant 0 : i32
    %c0_i32_0 = arith.constant 0 : i32
    return %arg0, %c0_i32 : i32, i32
  }
}

</mosaic_0001>

<bundles_post_ra>
// kernel: fcnet_forward.1
= control target key start
LH: loop header
LB: loop body
LE: loop exit
PB: predicated region body
PF: predicated region fallthrough
CT: control target
= control target key end

     0   :  { %12 = vsyncpa [#allocation3], 0  ;;  %s1607_s0 = inlined_call_operand.vmem [shape: f32[2,1024], index: 0, kind: input, shape index: {}]   ;;  %s1608_s1 = inlined_call_operand.hbm [shape: bf16[1024,128], index: 1, kind: input, shape index: {}]   ;;  %s1609_s2 = inlined_call_operand.vmem [shape: f32[1,128], index: 2, kind: input, shape index: {}]   ;;  %s1610_s3 = inlined_call_operand.vmem [shape: bf16[128,128], index: 3, kind: input, shape index: {}]   ;;  %s1611_s4 = inlined_call_operand.vmem [shape: f32[1,128], index: 4, kind: input, shape index: {}]   ;;  %s1612_s5 = inlined_call_operand.vmem [shape: bf16[128,128], index: 5, kind: input, shape index: {}]   ;;  %s1613_s6 = inlined_call_operand.vmem [shape: f32[1,128], index: 6, kind: input, shape index: {}]   ;;  %s1614_s7 = inlined_call_operand.hbm [shape: f32[2,128], index: 7, kind: output, shape index: {}]  }
   0x1   :  { %13 = vsyncpa [#allocation4], 0  ;;  %s1443_s24 = smov [#allocation2]  }
   0x2   :  { %s21_s25 = sshll.u32 %s1443_s24, 4  ;;  %s22_s25 = int_to_ptr.vmem [resolvable:$true] %s21_s25 }
   0x3   :  { %s1407_s26 = scalar_lea.vmem %s22_s25, 8192  ;;  %p1412_p1 = scmp.lt.s32.totalorder %s22_s25, %s22_s25 }
   0x4   :  { %p1408_p0 = scmp.ne.s32.totalorder %s22_s25, %s1407_s26  ;;  %p1413_p2 = scmp.lt.s32.totalorder %s1407_s26, %s1407_s26 }
   0x6   :  { %p1414_p3 = por %p1413_p2, %p1412_p1 }
   0x8   :  { %p1415_p4 = pnand %p1414_p3, %p1408_p0 }
   0xa   :  { %1418 = shalt.err (!%p1415_p4)
}
   0xb   :  { %s1444_s27 = smov 64   ;;  %s1445_s28 = smov 4  }
   0xc   :  { %27 = dma.hbm_to_vmem [thread:$0]  %s1608_s1, 8192, %s22_s25, [#allocation3], %s1444_s27, %s1444_s27, %s1445_s28  }
   0xd   :  { %1439 = dma.done.wait [#allocation3], 8192  }
   0xe   :  { %1440 = vsyncadd [#allocation3], 4294959104  ;;  %v1307_v0 = vld [vmem:[#allocation2 + $0x78] sm:$0xff]   ;;  %v1311_v4 = vld [vmem:[#allocation2 + $0x70] sm:$0xff]   ;;  %v1446_v24 = vmov 1983009808   ;;  %v65_v26 = vlaneseq }
   0xf   :  { %v1308_v1 = vld [vmem:[#allocation2 + $0xf8] sm:$0xff]   ;;  %1152 = vmatprep.subr.bf16.mxu0 %v1307_v0  ;;  %v1312_v5 = vld [vmem:[#allocation2 + $0xf0] sm:$0xff]   ;;  %v1315_v8 = vld [vmem:[#allocation2 + $0x68] sm:$0xff]   ;;  %v63_v25 = vunpack.c.l.s4 %v1446_v24  ;;  %vm1448_vm0 = vmmov 0  }
  0x10   :  { %v1309_v2 = vld [vmem:[#allocation2 + $0x38] sm:$0xff]   ;;  %1174 = vmatprep.subr.bf16.mxu1 %v1308_v1  ;;  %v1313_v6 = vld [vmem:[#allocation2 + $0x30] sm:$0xff]   ;;  %v1316_v9 = vld [vmem:[#allocation2 + $0xe8] sm:$0xff]   ;;  %v66_v32 = vshrl.u32 %v65_v26, 7 }
  0x11   :  { %v1310_v3 = vld [vmem:[#allocation2 + $0xb8] sm:$0xff]   ;;  %1153 = vmatpush3.bf16.msra.mxu0 %v1309_v2  ;;  %v1314_v7 = vld [vmem:[#allocation2 + $0xb0] sm:$0xff]   ;;  %v1317_v10 = vld [vmem:[#allocation2 + $0x28] sm:$0xff]   ;;  %v64_v31 = vunpack.c.0.s8 %v63_v25 }
  0x12   :  { %1175 = vmatpush3.bf16.msra.mxu1 %v1310_v3  ;;  %1154 = vmatprep.subr.bf16.mxu0 %v1311_v4  ;;  %v1318_v11 = vld [vmem:[#allocation2 + $0xa8] sm:$0xff]   ;;  %v1319_v12 = vld [vmem:[#allocation2 + $0x60] sm:$0xff]   ;;  %v1323_v16 = vld [vmem:[#allocation2 + $0x58] sm:$0xff]  }
  0x13   :  { %1176 = vmatprep.subr.bf16.mxu1 %v1312_v5  ;;  %v1320_v13 = vld [vmem:[#allocation2 + $0xe0] sm:$0xff]   ;;  %v1324_v17 = vld [vmem:[#allocation2 + $0xd8] sm:$0xff]   ;;  %v1327_v20 = vld [vmem:[#allocation2 + $0x50] sm:$0xff]   ;;  %v1495_v37 = vsub.s32 %v64_v31, %v66_v32 }
  0x14   :  { %v1321_v14 = vld [vmem:[#allocation2 + $0x20] sm:$0xff]   ;;  %v1325_v18 = vld [vmem:[#allocation2 + $0x18] sm:$0xff]   ;;  %v1328_v21 = vld [vmem:[#allocation2 + $0xd0] sm:$0xff]  }
  0x15   :  { %1155 = vmatpush3.bf16.msra.mxu0 %v1313_v6  ;;  %v1322_v15 = vld [vmem:[#allocation2 + $0xa0] sm:$0xff]   ;;  %v1326_v19 = vld [vmem:[#allocation2 + $0x98] sm:$0xff]   ;;  %v1329_v22 = vld [vmem:[#allocation2 + $0x10] sm:$0xff]  }
  0x16   :  { %1177 = vmatpush3.bf16.msra.mxu1 %v1314_v7  ;;  %1156 = vmatprep.subr.bf16.mxu0 %v1315_v8  ;;  %v1330_v23 = vld [vmem:[#allocation2 + $0x90] sm:$0xff]   ;;  %v1331_v27 = vld [vmem:[#allocation2 + $0x48] sm:$0xff]   ;;  %v1335_v33 = vld [vmem:[#allocation2 + $0x40] sm:$0xff]  }
  0x17   :  { %1178 = vmatprep.subr.bf16.mxu1 %v1316_v9  ;;  %v1332_v28 = vld [vmem:[#allocation2 + $0xc8] sm:$0xff]   ;;  %v1336_v34 = vld [vmem:[#allocation2 + $0xc0] sm:$0xff]   ;;  %v1345_v44 = vld [vmem:[#allocation2 + $0x178] sm:$0xff]  }
  0x18   :  { %v1333_v29 = vld [vmem:[#allocation2 + $0x8] sm:$0xff]   ;;  %v1337_v35 = vld [vmem:[#allocation2] sm:$0xff]   ;;  %v1346_v47 = vld [vmem:[#allocation2 + $0x1f8] sm:$0xff]  }
  0x19   :  { %1157 = vmatpush3.bf16.msra.mxu0 %v1317_v10  ;;  %v1334_v30 = vld [vmem:[#allocation2 + $0x88] sm:$0xff]   ;;  %v1338_v36 = vld [vmem:[#allocation2 + $0x80] sm:$0xff]   ;;  %v1347_v50 = vld [vmem:[#allocation2 + $0x138] sm:$0xff]  }
  0x1a   :  { %1179 = vmatpush3.bf16.msra.mxu1 %v1318_v11  ;;  %1158 = vmatprep.subr.bf16.mxu0 %v1319_v12  ;;  %v1339_v38 = vld [vmem:[%s1607_s0] ss:$16 sps:$4 sm:$0xff]   ;;  %v1343_v40 = vld [vmem:[%s1607_s0 + $0x4] ss:$16 sps:$4 sm:$0xff]   ;;  %v1348_v53 = vld [vmem:[#allocation2 + $0x1b8] sm:$0xff]  }
  0x1b   :  { %1180 = vmatprep.subr.bf16.mxu1 %v1320_v13  ;;  %v1341_v39 = vld [vmem:[%s1607_s0 + $0x20] ss:$16 sps:$4 sm:$0xff]   ;;  %v1344_v41 = vld [vmem:[%s1607_s0 + $0x24] ss:$16 sps:$4 sm:$0xff]   ;;  %v68_v42 = vrot.slane %v1339_v38, %v1495_v37  ;;  %v75_v45 = vrot.slane %v1343_v40, %v1495_v37  ;;  %v1353_v62 = vld [vmem:[#allocation2 + $0x168] sm:$0xff]   ;;  %v1447_v40 = vmov 0.0  }
  0x1c   :  { %v82_v43 = vrot.slane %v1341_v39, %v1495_v37  ;;  %v89_v46 = vrot.slane %v1344_v41, %v1495_v37  ;;  %v1349_v56 = vld [vmem:[#allocation2 + $0x170] sm:$0xff]   ;;  %v1354_v63 = vld [vmem:[#allocation2 + $0x1e8] sm:$0xff]   ;;  %v1357_v2 = vld [vmem:[#allocation2 + $0x160] sm:$0xff]  }
  0x1d   :  { %1159 = vmatpush3.bf16.msra.mxu0 %v1321_v14  ;;  %v1350_v59 = vld [vmem:[#allocation2 + $0x1f0] sm:$0xff]   ;;  %v1355_v0 = vld [vmem:[#allocation2 + $0x128] sm:$0xff]   ;;  %v1358_v3 = vld [vmem:[#allocation2 + $0x1e0] sm:$0xff]  }
  0x1e   :  { %1181 = vmatpush3.bf16.msra.mxu1 %v1322_v15  ;;  %1160 = vmatprep.subr.bf16.mxu0 %v1323_v16  ;;  %v91_v48 = vcombine.high %v68_v42, %v82_v43  ;;  %v90_v49 = vcombine.low %v68_v42, %v82_v43  ;;  %v93_v51 = vcombine.high %v75_v45, %v89_v46  ;;  %v1351_v60 = vld [vmem:[#allocation2 + $0x130] sm:$0xff]   ;;  %v1356_v1 = vld [vmem:[#allocation2 + $0x1a8] sm:$0xff]   ;;  %v1359_v4 = vld [vmem:[#allocation2 + $0x120] sm:$0xff]  }
  0x1f   :  { %1182 = vmatprep.subr.bf16.mxu1 %v1324_v17  ;;  %v92_v52 = vcombine.low %v75_v45, %v89_v46  ;;  %v1352_v61 = vld [vmem:[#allocation2 + $0x1b0] sm:$0xff]   ;;  %v1360_v5 = vld [vmem:[#allocation2 + $0x1a0] sm:$0xff]   ;;  %v1361_v6 = vld [vmem:[#allocation2 + $0x158] sm:$0xff]  }
  0x20   :  { %v139_v54 = vpack.c.bf16 %v91_v48, %v91_v48  ;;  %v138_v55 = vpack.c.bf16 %v90_v49, %v90_v49  ;;  %v141_v57 = vpack.c.bf16 %v93_v51, %v93_v51  ;;  %v1362_v7 = vld [vmem:[#allocation2 + $0x1d8] sm:$0xff]   ;;  %v1365_v10 = vld [vmem:[#allocation2 + $0x150] sm:$0xff]   ;;  %v1369_v14 = vld [vmem:[#allocation2 + $0x148] sm:$0xff]  }
  0x21   :  { %1161 = vmatpush3.bf16.msra.mxu0 %v1325_v18  ;;  %v140_v58 = vpack.c.bf16 %v92_v52, %v92_v52  ;;  %v1363_v8 = vld [vmem:[#allocation2 + $0x118] sm:$0xff]   ;;  %v1366_v11 = vld [vmem:[#allocation2 + $0x1d0] sm:$0xff]   ;;  %v1370_v15 = vld [vmem:[#allocation2 + $0x1c8] sm:$0xff]  }
  0x22   :  { %1183 = vmatpush3.bf16.msra.mxu1 %v1326_v19  ;;  %1162 = vmatprep.subr.bf16.mxu0 %v1327_v20  ;;  %v1364_v9 = vld [vmem:[#allocation2 + $0x198] sm:$0xff]   ;;  %v1367_v12 = vld [vmem:[#allocation2 + $0x110] sm:$0xff]   ;;  %v1371_v16 = vld [vmem:[#allocation2 + $0x108] sm:$0xff]  }
  0x23   :  { %1184 = vmatprep.subr.bf16.mxu1 %v1328_v21  ;;  %697 = vmatprep.mubr.bf16.mxu0 %v139_v54  ;;  %v1368_v13 = vld [vmem:[#allocation2 + $0x190] sm:$0xff]   ;;  %v1372_v17 = vld [vmem:[#allocation2 + $0x188] sm:$0xff]   ;;  %v1373_v18 = vld [vmem:[#allocation2 + $0x140] sm:$0xff]  }
  0x24   :  { %737 = vmatprep.mubr.bf16.mxu1 %v141_v57  ;;  %v1374_v19 = vld [vmem:[#allocation2 + $0x1c0] sm:$0xff]   ;;  %v1381_v24 = vld [vmem:[%s1607_s0 + $0xc] ss:$16 sps:$4 sm:$0xff]   ;;  %v1392_v48 = vld [vmem:[%s1612_s5 + $0x30] sm:$0xff]  }
  0x25   :  { %1163 = vmatpush3.bf16.msra.mxu0 %v1329_v22  ;;  %v1375_v20 = vld [vmem:[#allocation2 + $0x100] sm:$0xff]   ;;  %v1377_v22 = vld [vmem:[%s1607_s0 + $0x8] ss:$16 sps:$4 sm:$0xff]   ;;  %v1382_v25 = vld [vmem:[%s1607_s0 + $0x2c] ss:$16 sps:$4 sm:$0xff]  }
  0x26   :  { %1185 = vmatpush3.bf16.msra.mxu1 %v1330_v23  ;;  %1164 = vmatprep.subr.bf16.mxu0 %v1331_v27  ;;  %v1376_v21 = vld [vmem:[#allocation2 + $0x180] sm:$0xff]   ;;  %v1379_v23 = vld [vmem:[%s1607_s0 + $0x28] ss:$16 sps:$4 sm:$0xff]   ;;  %v104_v26 = vrot.slane %v1377_v22, %v1495_v37  ;;  %v1396_v52 = vld [vmem:[%s1612_s5 + $0x10] sm:$0xff]  }
  0x27   :  { %1186 = vmatprep.subr.bf16.mxu1 %v1332_v28  ;;  %v118_v27 = vrot.slane %v1379_v23, %v1495_v37  ;;  %v111_v28 = vrot.slane %v1381_v24, %v1495_v37  ;;  %v1383_v39 = vld [vmem:[%s1610_s3 + $0x38] sm:$0xff]   ;;  %v1385_v41 = vld [vmem:[%s1610_s3 + $0x28] sm:$0xff]   ;;  %v1386_v42 = vld [vmem:[%s1610_s3 + $0x20] sm:$0xff]  }
  0x28   :  { %v1387_v43 = vld [vmem:[%s1610_s3 + $0x18] sm:$0xff]   ;;  %v1389_v45 = vld [vmem:[%s1610_s3 + $0x8] sm:$0xff]   ;;  %v1390_v46 = vld [vmem:[%s1610_s3] sm:$0xff]  }
  0x29   :  { %1165 = vmatpush3.bf16.msra.mxu0 %v1333_v29  ;;  %v125_v29 = vrot.slane %v1382_v25, %v1495_v37  ;;  %v126_v31 = vcombine.low %v104_v26, %v118_v27  ;;  %v1384_v37 = vld [vmem:[%s1610_s3 + $0x30] sm:$0xff]   ;;  %v1393_v49 = vld [vmem:[%s1612_s5 + $0x28] sm:$0xff]   ;;  %v1395_v51 = vld [vmem:[%s1612_s5 + $0x18] sm:$0xff]  }
  0x2a   :  { %1187 = vmatpush3.bf16.msra.mxu1 %v1334_v30  ;;  %1166 = vmatprep.subr.bf16.mxu0 %v1335_v33  ;;  %v127_v30 = vcombine.high %v104_v26, %v118_v27  ;;  %v1143_v26 = vld [vmem:[%s1613_s6] ss:$0 sm:$0xff] }
  0x2b   :  { %1188 = vmatprep.subr.bf16.mxu1 %v1336_v34  ;;  %v129_v32 = vcombine.high %v111_v28, %v125_v29  ;;  %v128_v33 = vcombine.low %v111_v28, %v125_v29 }
  0x2c   :  { %v143_v34 = vpack.c.bf16 %v127_v30, %v127_v30 }
  0x2d   :  { %1167 = vmatpush3.bf16.msra.mxu0 %v1337_v35  ;;  %v142_v35 = vpack.c.bf16 %v126_v31, %v126_v31  ;;  %v144_v38 = vpack.c.bf16 %v128_v33, %v128_v33 }
  0x2e   :  { %1189 = vmatpush3.bf16.msra.mxu1 %v1338_v36  ;;  %1196 = vmatprep.subr.bf16.mxu0 %v1345_v44  ;;  %v145_v36 = vpack.c.bf16 %v129_v32, %v129_v32  ;;  %v1388_v44 = vld [vmem:[%s1610_s3 + $0x10] sm:$0xff]  }
  0x2f   :  { %1218 = vmatprep.subr.bf16.mxu1 %v1346_v47  ;;  %v1391_v47 = vld [vmem:[%s1612_s5 + $0x38] sm:$0xff]  }
  0x30   :  { %698 = vmatmul.mubr.bf16.vlgmr.msra.gmra.mxu0 %v138_v55 }
  0x31   :  { %738 = vmatmul.mubr.bf16.vlgmr.msra.gmra.mxu1 %v140_v58  ;;  %1197 = vmatpush3.bf16.msra.mxu0 %v1347_v50  ;;  %v1394_v50 = vld [vmem:[%s1612_s5 + $0x20] sm:$0xff]  }
  0x32   :  { %1219 = vmatpush3.bf16.msra.mxu1 %v1348_v53  ;;  %1198 = vmatprep.subr.bf16.mxu0 %v1349_v56 }
  0x33   :  { %1220 = vmatprep.subr.bf16.mxu1 %v1350_v59  ;;  %777 = vmatprep.mubr.bf16.mxu0 %v143_v34 }
  0x34   :  { %817 = vmatprep.mubr.bf16.mxu1 %v145_v36 }
  0x35   :  { %1199 = vmatpush3.bf16.msra.mxu0 %v1351_v60 }
  0x36   :  { %1221 = vmatpush3.bf16.msra.mxu1 %v1352_v61  ;;  %1200 = vmatprep.subr.bf16.mxu0 %v1353_v62  ;;  %v1069_v62 = vld [vmem:[%s1609_s2] ss:$0 sm:$0xff] }
  0x37   :  { %1222 = vmatprep.subr.bf16.mxu1 %v1354_v63 }
  0x39   :  { %1201 = vmatpush3.bf16.msra.mxu0 %v1355_v0 }
  0x3a   :  { %1223 = vmatpush3.bf16.msra.mxu1 %v1356_v1  ;;  %1202 = vmatprep.subr.bf16.mxu0 %v1357_v2 }
  0x3b   :  { %1224 = vmatprep.subr.bf16.mxu1 %v1358_v3 }
  0x3d   :  { %1203 = vmatpush3.bf16.msra.mxu0 %v1359_v4 }
  0x3e   :  { %1225 = vmatpush3.bf16.msra.mxu1 %v1360_v5  ;;  %1204 = vmatprep.subr.bf16.mxu0 %v1361_v6 }
  0x3f   :  { %1226 = vmatprep.subr.bf16.mxu1 %v1362_v7 }
  0x41   :  { %1205 = vmatpush3.bf16.msra.mxu0 %v1363_v8 }
  0x42   :  { %1227 = vmatpush3.bf16.msra.mxu1 %v1364_v9  ;;  %1206 = vmatprep.subr.bf16.mxu0 %v1365_v10 }
  0x43   :  { %1228 = vmatprep.subr.bf16.mxu1 %v1366_v11 }
  0x45   :  { %1207 = vmatpush3.bf16.msra.mxu0 %v1367_v12 }
  0x46   :  { %1229 = vmatpush3.bf16.msra.mxu1 %v1368_v13  ;;  %1208 = vmatprep.subr.bf16.mxu0 %v1369_v14 }
  0x47   :  { %1230 = vmatprep.subr.bf16.mxu1 %v1370_v15 }
  0x49   :  { %1209 = vmatpush3.bf16.msra.mxu0 %v1371_v16  ;;  %v1397_v16 = vld [vmem:[%s1612_s5 + $0x8] sm:$0xff]  }
  0x4a   :  { %1231 = vmatpush3.bf16.msra.mxu1 %v1372_v17  ;;  %1210 = vmatprep.subr.bf16.mxu0 %v1373_v18  ;;  %v1398_v17 = vld [vmem:[%s1612_s5] sm:$0xff]  }
  0x4b   :  { %1232 = vmatprep.subr.bf16.mxu1 %v1374_v19  ;;  %v1134_v18 = vld [vmem:[%s1611_s4] ss:$0 sm:$0xff] }
  0x4d   :  { %1211 = vmatpush3.bf16.msra.mxu0 %v1375_v20 }
  0x4e   :  { %1233 = vmatpush3.bf16.msra.mxu1 %v1376_v21  ;;  %1258 = vmatprep.subr.bf16.mxu0 %v1447_v40 }
  0x4f   :  { %1278 = vmatprep.subr.bf16.mxu1 %v1447_v40 }
  0x50   :  { %778 = vmatmul.mubr.bf16.vlgmr.msra.gmra.mxu0 %v142_v35 }
  0x51   :  { %818 = vmatmul.mubr.bf16.vlgmr.msra.gmra.mxu1 %v144_v38  ;;  %1259 = vmatpush3.bf16.msra.mxu0 %v1383_v39 }
  0x52   :  { %1260 = vmatprep.subr.bf16.mxu0 %v1447_v40  ;;  %1274 = vmatprep.mubr.msk.bf16.mxu0 %vm1448_vm0, %v1447_v40 }
  0x53   :  { %1294 = vmatprep.mubr.msk.bf16.mxu1 %vm1448_vm0, %v1447_v40  ;;  %1279 = vmatpush3.bf16.msra.mxu1 %v1391_v47 }
  0x54   :  { %1280 = vmatprep.subr.bf16.mxu1 %v1447_v40 }
  0x55   :  { %1261 = vmatpush3.bf16.msra.mxu0 %v1384_v37 }
  0x56   :  { %1262 = vmatprep.subr.bf16.mxu0 %v1447_v40 }
  0x57   :  { %1281 = vmatpush3.bf16.msra.mxu1 %v1392_v48 }
  0x58   :  { %1282 = vmatprep.subr.bf16.mxu1 %v1447_v40 }
  0x59   :  { %1263 = vmatpush3.bf16.msra.mxu0 %v1385_v41 }
  0x5a   :  { %1264 = vmatprep.subr.bf16.mxu0 %v1447_v40 }
  0x5b   :  { %1283 = vmatpush3.bf16.msra.mxu1 %v1393_v49 }
  0x5c   :  { %1284 = vmatprep.subr.bf16.mxu1 %v1447_v40 }
  0x5d   :  { %1265 = vmatpush3.bf16.msra.mxu0 %v1386_v42 }
  0x5e   :  { %1266 = vmatprep.subr.bf16.mxu0 %v1447_v40 }
  0x5f   :  { %1285 = vmatpush3.bf16.msra.mxu1 %v1394_v50 }
  0x60   :  { %1286 = vmatprep.subr.bf16.mxu1 %v1447_v40 }
  0x61   :  { %1267 = vmatpush3.bf16.msra.mxu0 %v1387_v43 }
  0x62   :  { %1268 = vmatprep.subr.bf16.mxu0 %v1447_v40 }
  0x63   :  { %1287 = vmatpush3.bf16.msra.mxu1 %v1395_v51 }
  0x64   :  { %1288 = vmatprep.subr.bf16.mxu1 %v1447_v40 }
  0x65   :  { %1269 = vmatpush3.bf16.msra.mxu0 %v1388_v44 }
  0x66   :  { %1270 = vmatprep.subr.bf16.mxu0 %v1447_v40 }
  0x67   :  { %1289 = vmatpush3.bf16.msra.mxu1 %v1396_v52 }
  0x68   :  { %1290 = vmatprep.subr.bf16.mxu1 %v1447_v40 }
  0x69   :  { %1271 = vmatpush3.bf16.msra.mxu0 %v1389_v45 }
  0x6a   :  { %1272 = vmatprep.subr.bf16.mxu0 %v1447_v40 }
  0x6b   :  { %1291 = vmatpush3.bf16.msra.mxu1 %v1397_v16 }
  0x6c   :  { %1292 = vmatprep.subr.bf16.mxu1 %v1447_v40 }
  0x6d   :  { %1273 = vmatpush3.bf16.msra.mxu0 %v1390_v46 }
  0x6f   :  { %1293 = vmatpush3.bf16.msra.mxu1 %v1398_v17 }
  0xf0   :  { %v1168_v53 = vpop.f32.mrf.mxu0 }
  0xf1   :  { %v1190_v54 = vpop.f32.mrf.mxu1 }
  0xf2   :  { %v1169_v55 = vpop.f32.mrf.mxu0 }
  0xf3   :  { %v1191_v56 = vpop.f32.mrf.mxu1  ;;  %v1170_v61 = vadd.f32 %v1169_v55, %v1168_v53 }
  0xf4   :  { %v1171_v57 = vpop.f32.mrf.mxu0  ;;  %v1192_v0 = vadd.f32 %v1191_v56, %v1190_v54 }
  0xf5   :  { %v1193_v58 = vpop.f32.mrf.mxu1  ;;  %v700_v63 = vadd.f32 %v1170_v61, %v1069_v62 }
  0xf6   :  { %v1172_v59 = vpop.f32.mrf.mxu0 }
  0xf7   :  { %v1194_v60 = vpop.f32.mrf.mxu1  ;;  %v740_v4 = vadd.f32 %v1192_v0, %v700_v63 }
 0x110   :  { %v1212_v1 = vpop.f32.mrf.mxu0 }
 0x111   :  { %v1234_v2 = vpop.f32.mrf.mxu1 }
 0x112   :  { %v1213_v3 = vpop.f32.mrf.mxu0 }
 0x113   :  { %v1214_v5 = vadd.f32 %v1213_v3, %v1212_v1  ;;  %v1235_v6 = vpop.f32.mrf.mxu1 }
 0x114   :  { %v1215_v7 = vpop.f32.mrf.mxu0  ;;  %v1236_v9 = vadd.f32 %v1235_v6, %v1234_v2 }
 0x115   :  { %v780_v8 = vadd.f32 %v1214_v5, %v740_v4  ;;  %v1237_v10 = vpop.f32.mrf.mxu1 }
 0x116   :  { %v1216_v11 = vpop.f32.mrf.mxu0 }
 0x117   :  { %v820_v12 = vadd.f32 %v1236_v9, %v780_v8  ;;  %v1238_v13 = vpop.f32.mrf.mxu1 }
 0x119   :  { %v825_v14 = vmax.f32 %v820_v12, 0.0 }
 0x11b   :  { %v826_v15 = vpack.c.bf16 %v825_v14, %v825_v14 }
 0x11d   :  { %1275 = vmatmul.mubr.bf16.vlgmr.msra.gmra.mxu0 %v826_v15 }
 0x1dd   :  { %v932_v19 = vpop.f32.mrf.mxu0 }
 0x1de   :  { %v933_v20 = vadd.f32 %v1134_v18, %v932_v19 }
 0x1df   :  { %v1276_v21 = vpop.f32.mrf.mxu0 }
 0x1e0   :  { %v938_v22 = vmax.f32 %v933_v20, 0.0 }
 0x1e1   :  { %v935_v23 = vpop.f32.mrf.mxu0 }
 0x1e2   :  { %v939_v24 = vpack.c.bf16 %v938_v22, %v938_v22 }
 0x1e3   :  { %v1277_v25 = vpop.f32.mrf.mxu0 }
 0x1e4   :  { %1295 = vmatmul.mubr.bf16.vlgmr.msra.gmra.mxu1 %v939_v24 }
 0x2a4   :  { %v1045_v27 = vpop.f32.mrf.mxu1 }
 0x2a5   :  { %v1046_v28 = vadd.f32 %v1143_v26, %v1045_v27 }
 0x2a6   :  { %v1296_v29 = vpop.f32.mrf.mxu1 }
 0x2a7   :  { %1051 = vst [vmem:[#allocation5] sm:$0xff] %v1046_v28 }
 0x2a8   :  { %v1048_v30 = vpop.f32.mrf.mxu1 }
 0x2aa   :  { %v1297_v31 = vpop.f32.mrf.mxu1 }
 0x2ab   :  { %1056 = vsyncadd [#allocation4], 96  ;;  %s1449_s4 = smov [#allocation5]  }
 0x2ac   :  { %s1057_s5 = sshll.u32 %s1449_s4, 4  ;;  %s1058_s5 = int_to_ptr.vmem [resolvable:$true] %s1057_s5 }
 0x2ad   :  { %s1419_s9 = scalar_lea.vmem %s1058_s5, 32  ;;  %s1423_s10 = scalar_lea.vmem %s1058_s5, 128 }
 0x2ae   :  { %p1420_p5 = scmp.ne.s32.totalorder %s1058_s5, %s1419_s9  ;;  %p1424_p6 = scmp.lt.s32.totalorder %s1058_s5, %s1058_s5 }
 0x2af   :  { %p1425_p7 = scmp.lt.s32.totalorder %s1423_s10, %s1419_s9 }
 0x2b1   :  { %p1426_p8 = por %p1425_p7, %p1424_p6 }
 0x2b3   :  { %p1427_p9 = pnand %p1426_p8, %p1420_p5 }
 0x2b5   :  { %1430 = shalt.err (!%p1427_p9)
}
 0x2b6   :  { %s1450_s11 = smov 32   ;;  %s1451_s6 = smov 2  }
 0x2b7   :  { %1063 = dma.vmem_to_hbm [thread:$0]  %s1058_s5, 32, %s1614_s7, [#allocation4], %s1450_s11, %s1450_s11, %s1451_s6  }
 0x2b8   :  { %1441 = dma.done.wait [#allocation4], 128  }
 0x2b9   :  { %1442 = vsyncadd [#allocation4], 4294967168 }
 0x2ba   :  { %1067 = vsyncpa [#allocation3], 1 }
 0x2bb   :  { %1068 = vsyncpa [#allocation4], 1 }

</bundles_post_ra>
